<compile_context>
chip_gen: v7x
topology: tpu7x:2x2x1
jax: 0.10.0
libtpu: 0.0.40
codegen_flags: <defaults>
</compile_context>

<pallas_src>
import math
import numpy as np
import jax
import jax.numpy as jnp
from jax.experimental import pallas as pl
from jax.experimental.pallas import tpu as pltpu


def _window_1d(kind: str, n: int) -> np.ndarray:
    # The PyTorch module uses *numpy* (symmetric) windows, so we do too.
    if kind == "hamming":
        return np.hamming(n)
    if kind == "blackman":
        return np.blackman(n)
    if kind == "kaiser":
        return np.kaiser(n, 14)
    raise ValueError(f"unknown window {kind}")


def _round_up(a: int, b: int) -> int:
    return ((a + b - 1) // b) * b


def _make_conv_kernel(KH, KW, Wp, Cp, Lk_img, n_tile):
    taps = [(kh, kw) for kh in range(KH) for kw in range(KW)]

    def kernel(x_ref, w2_ref, b_ref, o_ref, p_ref):
        # x_ref:  (n_tile, Cp, FLAT)       zero-padded image, rows flattened w/ stride Wp
        # w2_ref: (Cout, KH*KW*Cp)         pre-windowed weight, K ordered (kh, kw, ci)
        # b_ref:  (Cout, 1)
        # o_ref:  (n_tile, Cout, Lk_img)   lane-dense padded-width output blocks
        # p_ref:  VMEM scratch (KH*KW*Cp, n_tile*Lk_img)   im2col matrix

        # im2col: one lane-offset slice per (tap, image).  Destination offsets
        # (t*Cp sublanes, b*Lk_img lanes) are always tile-aligned -> full stores.
        for t, (kh, kw) in enumerate(taps):
            s = kh * Wp + kw
            for b in range(n_tile):
                p_ref[t * Cp:(t + 1) * Cp,
                      b * Lk_img:(b + 1) * Lk_img] = x_ref[b, :, s:s + Lk_img]

        # Single fat-K MXU matmul over the whole batch tile; bias in the epilogue.
        acc = jnp.dot(w2_ref[...], p_ref[...],
                      preferred_element_type=jnp.float32) + b_ref[...]

        # Per-image blocks of acc are 128-lane aligned -> unmasked full stores.
        for b in range(n_tile):
            o_ref[b, :, :] = acc[:, b * Lk_img:(b + 1) * Lk_img]

    return kernel


def conv2d_window_pallas(x_nchw, weight, bias=None, *, stride=1, padding=1,
                         dilation=1, groups=1, window="hamming", n_tile=None):
    """x_nchw: (N, Cin, H, W) f32; weight: (Cout, Cin, KH, KW); bias: (Cout,) or None."""
    N, Cin, H, W = x_nchw.shape
    Cout, Cin_w, KH, KW = weight.shape
    assert Cin_w == Cin
    assert KH == KW, "windowing uses outer(win(KW), win(KW)); requires square kernel"
    assert stride == 1 and dilation == 1 and groups == 1, \
        "kernel implements stride=1, dilation=1, groups=1 (module defaults)"

    ph = pw = int(padding)
    Hp, Wp = H + 2 * ph, W + 2 * pw
    Ho, Wo = Hp - KH + 1, Wp - KW + 1

    Cp = _round_up(Cin, 8)                     # pad Cin to full sublane groups
    K = KH * KW * Cp                           # matmul K-dim (with zero rows)
    Lk_img = _round_up(Ho * Wp, 128)           # per-image matmul-N width (lane aligned)
    s_max = (KH - 1) * Wp + (KW - 1)           # largest tap offset
    FLAT = max(Hp * Wp, s_max + Lk_img)        # flat image length so all slices fit

    # ---- one-time wrapper prep (plain JAX / numpy, tiny) ----
    w1d = _window_1d(window, KW)
    win2d = np.outer(w1d, w1d).astype(np.float32)                     # (KH, KW)
    w_win = weight.astype(jnp.float32) * jnp.asarray(win2d)[None, None, :, :]
    # (Cout, KH, KW, Cin) -> pad Cin->Cp with zeros -> (Cout, KH*KW*Cp)
    w2 = jnp.transpose(w_win, (0, 2, 3, 1))
    w2 = jnp.pad(w2, ((0, 0), (0, 0), (0, 0), (0, Cp - Cin))).reshape(Cout, K)
    if bias is None:
        bias = jnp.zeros((Cout,), jnp.float32)
    b2 = bias.reshape(Cout, 1).astype(jnp.float32)

    # pad channels to Cp, zero-pad spatially, flatten rows (stride Wp), pad flat len
    x_p = jnp.pad(x_nchw.astype(jnp.float32),
                  ((0, 0), (0, Cp - Cin), (ph, ph), (pw, pw)))         # (N,Cp,Hp,Wp)
    x_flat = x_p.reshape(N, Cp, Hp * Wp)
    x_flat = jnp.pad(x_flat, ((0, 0), (0, 0), (0, FLAT - Hp * Wp)))    # (N,Cp,FLAT)

    # ---- batch-tile selection from an 8 MiB per-step VMEM budget ----
    # (double-buffered x & out blocks + the im2col scratch; safe on v7x's 64 MiB
    #  and under the default scoped limits of v5e/v6e.)
    per_img_bytes = (2 * Cp * FLAT + 2 * Cout * Lk_img + K * Lk_img) * 4
    cap = max(1, (8 << 20) // per_img_bytes)
    if n_tile is None:
        n_tile = max(d for d in range(1, N + 1) if N % d == 0 and d <= cap)
    assert N % n_tile == 0 and n_tile <= cap
    grid = (N // n_tile,)

    kernel = _make_conv_kernel(KH, KW, Wp, Cp, Lk_img, n_tile)

    cost = pl.CostEstimate(
        flops=2 * N * Cout * (KH * KW * Cin) * Ho * Wo,
        transcendentals=0,
        bytes_accessed=4 * (N * Cp * FLAT + Cout * K + N * Cout * Lk_img),
    )

    out_flat = pl.pallas_call(
        kernel,
        out_shape=jax.ShapeDtypeStruct((N, Cout, Lk_img), jnp.float32),
        grid_spec=pltpu.PrefetchScalarGridSpec(
            num_scalar_prefetch=0,
            grid=grid,
            in_specs=[
                pl.BlockSpec((n_tile, Cp, FLAT), lambda n: (n, 0, 0)),
                pl.BlockSpec((Cout, K), lambda n: (0, 0)),
                pl.BlockSpec((Cout, 1), lambda n: (0, 0)),
            ],
            out_specs=pl.BlockSpec((n_tile, Cout, Lk_img), lambda n: (n, 0, 0)),
            scratch_shapes=[pltpu.VMEM((K, n_tile * Lk_img), jnp.float32)],
        ),
        compiler_params=pltpu.CompilerParams(dimension_semantics=("parallel",)),
        cost_estimate=cost,
    )(x_flat, w2, b2)

    # Wrapper-side crop: drop garbage lanes beyond Ho*Wp, then width Wp -> Wo.
    out = out_flat[:, :, :Ho * Wp].reshape(N, Cout, Ho, Wp)[:, :, :, :Wo]
    return out


if __name__ == "__main__":
    # Small shapes consistent with the module: batch=2, Cin=4, Cout=8, 16x16, k=3.
    N, Cin, Cout, H, W, Kk = 2, 4, 8, 16, 16, 3
    padding = 1

    key = jax.random.PRNGKey(0)
    kx, kw, kb = jax.random.split(key, 3)

    # Deterministic init mirroring _ConvNd.reset_parameters:
    # kaiming_uniform_(a=sqrt(5)) -> U(-1/sqrt(fan_in), 1/sqrt(fan_in)); same bound for bias.
    fan_in = Cin * Kk * Kk
    bound = 1.0 / math.sqrt(fan_in)
    weight = jax.random.uniform(kw, (Cout, Cin, Kk, Kk), jnp.float32, -bound, bound)
    bias = jax.random.uniform(kb, (Cout,), jnp.float32, -bound, bound)
    x = jax.random.normal(kx, (N, Cin, H, W), jnp.float32)

    out = conv2d_window_pallas(x, weight, bias, padding=padding, window="hamming")
    out = jax.block_until_ready(out)

    # Reference: XLA conv with the same (symmetric np.hamming) windowed weight.
    w1d = np.hamming(Kk)
    win2d = jnp.asarray(np.outer(w1d, w1d), dtype=jnp.float32)
    w_win = weight * win2d[None, None, :, :]
    ref = jax.lax.conv_general_dilated(
        x, w_win, window_strides=(1, 1),
        padding=((padding, padding), (padding, padding)),
        dimension_numbers=("NCHW", "OIHW", "NCHW"),
    ) + bias[None, :, None, None]
    ref = jax.block_until_ready(ref)

    assert out.shape == (N, Cout, H, W), out.shape
    assert jnp.allclose(out, ref, atol=1e-4, rtol=1e-4), float(jnp.max(jnp.abs(out - ref)))
    print("KERNEL_OK")
</pallas_src>

<mosaic_0001>
module attributes {stable_mosaic.version = 11 : i64} {
  func.func @kernel(%arg0: i32, %arg1: memref<2x8x422xf32, #tpu.memory_space<vmem>>, %arg2: memref<8x72xf32, #tpu.memory_space<vmem>>, %arg3: memref<8x1xf32, #tpu.memory_space<vmem>>, %arg4: memref<2x8x384xf32, #tpu.memory_space<vmem>>, %arg5: memref<72x768xf32, #tpu.memory_space<vmem>>) attributes {dimension_semantics = [#tpu.dimension_semantics<parallel>], iteration_bounds = array<i64: 1>, scalar_prefetch = 0 : i64, scratch_operands = 1 : i64, tpu.core_type = #tpu.core_type<tc>, window_params = [{transform_indices = @transform_0, window_bounds = array<i64: 2, 8, 422>}, {pipeline_mode = #tpu.pipeline_mode<synchronous>, transform_indices = @transform_1, window_bounds = array<i64: 8, 72>}, {pipeline_mode = #tpu.pipeline_mode<synchronous>, transform_indices = @transform_2, window_bounds = array<i64: 8, 1>}, {transform_indices = @transform_3, window_bounds = array<i64: 2, 8, 384>}]} {
    %c0 = arith.constant 0 : index
    %c0_0 = arith.constant 0 : index
    %c0_1 = arith.constant 0 : index
    %0 = vector.load %arg1[%c0, %c0_0, %c0_1] : memref<2x8x422xf32, #tpu.memory_space<vmem>>, vector<1x8x384xf32>
    %1 = vector.shape_cast %0 : vector<1x8x384xf32> to vector<8x384xf32>
    %c0_2 = arith.constant 0 : index
    %c0_3 = arith.constant 0 : index
    %2 = vector.load %arg5[%c0_2, %c0_3] : memref<72x768xf32, #tpu.memory_space<vmem>>, vector<8x384xf32>
    tpu.vector_store %arg5[%c0_2, %c0_3], %1 {strides = array<i32>} : memref<72x768xf32, #tpu.memory_space<vmem>>, vector<8x384xf32>,
    %c1 = arith.constant 1 : index
    %c0_4 = arith.constant 0 : index
    %c0_5 = arith.constant 0 : index
    %3 = vector.load %arg1[%c1, %c0_4, %c0_5] : memref<2x8x422xf32, #tpu.memory_space<vmem>>, vector<1x8x384xf32>
    %4 = vector.shape_cast %3 : vector<1x8x384xf32> to vector<8x384xf32>
    %c0_6 = arith.constant 0 : index
    %c384 = arith.constant 384 : index
    %5 = vector.load %arg5[%c0_6, %c384] : memref<72x768xf32, #tpu.memory_space<vmem>>, vector<8x384xf32>
    tpu.vector_store %arg5[%c0_6, %c384], %4 {strides = array<i32>} : memref<72x768xf32, #tpu.memory_space<vmem>>, vector<8x384xf32>,
    %c0_7 = arith.constant 0 : index
    %c0_8 = arith.constant 0 : index
    %c1_9 = arith.constant 1 : index
    %6 = vector.load %arg1[%c0_7, %c0_8, %c1_9] : memref<2x8x422xf32, #tpu.memory_space<vmem>>, vector<1x8x384xf32>
    %7 = vector.shape_cast %6 : vector<1x8x384xf32> to vector<8x384xf32>
    %c8 = arith.constant 8 : index
    %c0_10 = arith.constant 0 : index
    %8 = vector.load %arg5[%c8, %c0_10] : memref<72x768xf32, #tpu.memory_space<vmem>>, vector<8x384xf32>
    tpu.vector_store %arg5[%c8, %c0_10], %7 {strides = array<i32>} : memref<72x768xf32, #tpu.memory_space<vmem>>, vector<8x384xf32>,
    %c1_11 = arith.constant 1 : index
    %c0_12 = arith.constant 0 : index
    %c1_13 = arith.constant 1 : index
    %9 = vector.load %arg1[%c1_11, %c0_12, %c1_13] : memref<2x8x422xf32, #tpu.memory_space<vmem>>, vector<1x8x384xf32>
    %10 = vector.shape_cast %9 : vector<1x8x384xf32> to vector<8x384xf32>
    %c8_14 = arith.constant 8 : index
    %c384_15 = arith.constant 384 : index
    %11 = vector.load %arg5[%c8_14, %c384_15] : memref<72x768xf32, #tpu.memory_space<vmem>>, vector<8x384xf32>
    tpu.vector_store %arg5[%c8_14, %c384_15], %10 {strides = array<i32>} : memref<72x768xf32, #tpu.memory_space<vmem>>, vector<8x384xf32>,
    %c0_16 = arith.constant 0 : index
    %c0_17 = arith.constant 0 : index
    %c2 = arith.constant 2 : index
    %12 = vector.load %arg1[%c0_16, %c0_17, %c2] : memref<2x8x422xf32, #tpu.memory_space<vmem>>, vector<1x8x384xf32>
    %13 = vector.shape_cast %12 : vector<1x8x384xf32> to vector<8x384xf32>
    %c16 = arith.constant 16 : index
    %c0_18 = arith.constant 0 : index
    %14 = vector.load %arg5[%c16, %c0_18] : memref<72x768xf32, #tpu.memory_space<vmem>>, vector<8x384xf32>
    tpu.vector_store %arg5[%c16, %c0_18], %13 {strides = array<i32>} : memref<72x768xf32, #tpu.memory_space<vmem>>, vector<8x384xf32>,
    %c1_19 = arith.constant 1 : index
    %c0_20 = arith.constant 0 : index
    %c2_21 = arith.constant 2 : index
    %15 = vector.load %arg1[%c1_19, %c0_20, %c2_21] : memref<2x8x422xf32, #tpu.memory_space<vmem>>, vector<1x8x384xf32>
    %16 = vector.shape_cast %15 : vector<1x8x384xf32> to vector<8x384xf32>
    %c16_22 = arith.constant 16 : index
    %c384_23 = arith.constant 384 : index
    %17 = vector.load %arg5[%c16_22, %c384_23] : memref<72x768xf32, #tpu.memory_space<vmem>>, vector<8x384xf32>
    tpu.vector_store %arg5[%c16_22, %c384_23], %16 {strides = array<i32>} : memref<72x768xf32, #tpu.memory_space<vmem>>, vector<8x384xf32>,
    %c0_24 = arith.constant 0 : index
    %c0_25 = arith.constant 0 : index
    %c18 = arith.constant 18 : index
    %18 = vector.load %arg1[%c0_24, %c0_25, %c18] : memref<2x8x422xf32, #tpu.memory_space<vmem>>, vector<1x8x384xf32>
    %19 = vector.shape_cast %18 : vector<1x8x384xf32> to vector<8x384xf32>
    %c24 = arith.constant 24 : index
    %c0_26 = arith.constant 0 : index
    %20 = vector.load %arg5[%c24, %c0_26] : memref<72x768xf32, #tpu.memory_space<vmem>>, vector<8x384xf32>
    tpu.vector_store %arg5[%c24, %c0_26], %19 {strides = array<i32>} : memref<72x768xf32, #tpu.memory_space<vmem>>, vector<8x384xf32>,
    %c1_27 = arith.constant 1 : index
    %c0_28 = arith.constant 0 : index
    %c18_29 = arith.constant 18 : index
    %21 = vector.load %arg1[%c1_27, %c0_28, %c18_29] : memref<2x8x422xf32, #tpu.memory_space<vmem>>, vector<1x8x384xf32>
    %22 = vector.shape_cast %21 : vector<1x8x384xf32> to vector<8x384xf32>
    %c24_30 = arith.constant 24 : index
    %c384_31 = arith.constant 384 : index
    %23 = vector.load %arg5[%c24_30, %c384_31] : memref<72x768xf32, #tpu.memory_space<vmem>>, vector<8x384xf32>
    tpu.vector_store %arg5[%c24_30, %c384_31], %22 {strides = array<i32>} : memref<72x768xf32, #tpu.memory_space<vmem>>, vector<8x384xf32>,
    %c0_32 = arith.constant 0 : index
    %c0_33 = arith.constant 0 : index
    %c19 = arith.constant 19 : index
    %24 = vector.load %arg1[%c0_32, %c0_33, %c19] : memref<2x8x422xf32, #tpu.memory_space<vmem>>, vector<1x8x384xf32>
    %25 = vector.shape_cast %24 : vector<1x8x384xf32> to vector<8x384xf32>
    %c32 = arith.constant 32 : index
    %c0_34 = arith.constant 0 : index
    %26 = vector.load %arg5[%c32, %c0_34] : memref<72x768xf32, #tpu.memory_space<vmem>>, vector<8x384xf32>
    tpu.vector_store %arg5[%c32, %c0_34], %25 {strides = array<i32>} : memref<72x768xf32, #tpu.memory_space<vmem>>, vector<8x384xf32>,
    %c1_35 = arith.constant 1 : index
    %c0_36 = arith.constant 0 : index
    %c19_37 = arith.constant 19 : index
    %27 = vector.load %arg1[%c1_35, %c0_36, %c19_37] : memref<2x8x422xf32, #tpu.memory_space<vmem>>, vector<1x8x384xf32>
    %28 = vector.shape_cast %27 : vector<1x8x384xf32> to vector<8x384xf32>
    %c32_38 = arith.constant 32 : index
    %c384_39 = arith.constant 384 : index
    %29 = vector.load %arg5[%c32_38, %c384_39] : memref<72x768xf32, #tpu.memory_space<vmem>>, vector<8x384xf32>
    tpu.vector_store %arg5[%c32_38, %c384_39], %28 {strides = array<i32>} : memref<72x768xf32, #tpu.memory_space<vmem>>, vector<8x384xf32>,
    %c0_40 = arith.constant 0 : index
    %c0_41 = arith.constant 0 : index
    %c20 = arith.constant 20 : index
    %30 = vector.load %arg1[%c0_40, %c0_41, %c20] : memref<2x8x422xf32, #tpu.memory_space<vmem>>, vector<1x8x384xf32>
    %31 = vector.shape_cast %30 : vector<1x8x384xf32> to vector<8x384xf32>
    %c40 = arith.constant 40 : index
    %c0_42 = arith.constant 0 : index
    %32 = vector.load %arg5[%c40, %c0_42] : memref<72x768xf32, #tpu.memory_space<vmem>>, vector<8x384xf32>
    tpu.vector_store %arg5[%c40, %c0_42], %31 {strides = array<i32>} : memref<72x768xf32, #tpu.memory_space<vmem>>, vector<8x384xf32>,
    %c1_43 = arith.constant 1 : index
    %c0_44 = arith.constant 0 : index
    %c20_45 = arith.constant 20 : index
    %33 = vector.load %arg1[%c1_43, %c0_44, %c20_45] : memref<2x8x422xf32, #tpu.memory_space<vmem>>, vector<1x8x384xf32>
    %34 = vector.shape_cast %33 : vector<1x8x384xf32> to vector<8x384xf32>
    %c40_46 = arith.constant 40 : index
    %c384_47 = arith.constant 384 : index
    %35 = vector.load %arg5[%c40_46, %c384_47] : memref<72x768xf32, #tpu.memory_space<vmem>>, vector<8x384xf32>
    tpu.vector_store %arg5[%c40_46, %c384_47], %34 {strides = array<i32>} : memref<72x768xf32, #tpu.memory_space<vmem>>, vector<8x384xf32>,
    %c0_48 = arith.constant 0 : index
    %c0_49 = arith.constant 0 : index
    %c36 = arith.constant 36 : index
    %36 = vector.load %arg1[%c0_48, %c0_49, %c36] : memref<2x8x422xf32, #tpu.memory_space<vmem>>, vector<1x8x384xf32>
    %37 = vector.shape_cast %36 : vector<1x8x384xf32> to vector<8x384xf32>
    %c48 = arith.constant 48 : index
    %c0_50 = arith.constant 0 : index
    %38 = vector.load %arg5[%c48, %c0_50] : memref<72x768xf32, #tpu.memory_space<vmem>>, vector<8x384xf32>
    tpu.vector_store %arg5[%c48, %c0_50], %37 {strides = array<i32>} : memref<72x768xf32, #tpu.memory_space<vmem>>, vector<8x384xf32>,
    %c1_51 = arith.constant 1 : index
    %c0_52 = arith.constant 0 : index
    %c36_53 = arith.constant 36 : index
    %39 = vector.load %arg1[%c1_51, %c0_52, %c36_53] : memref<2x8x422xf32, #tpu.memory_space<vmem>>, vector<1x8x384xf32>
    %40 = vector.shape_cast %39 : vector<1x8x384xf32> to vector<8x384xf32>
    %c48_54 = arith.constant 48 : index
    %c384_55 = arith.constant 384 : index
    %41 = vector.load %arg5[%c48_54, %c384_55] : memref<72x768xf32, #tpu.memory_space<vmem>>, vector<8x384xf32>
    tpu.vector_store %arg5[%c48_54, %c384_55], %40 {strides = array<i32>} : memref<72x768xf32, #tpu.memory_space<vmem>>, vector<8x384xf32>,
    %c0_56 = arith.constant 0 : index
    %c0_57 = arith.constant 0 : index
    %c37 = arith.constant 37 : index
    %42 = vector.load %arg1[%c0_56, %c0_57, %c37] : memref<2x8x422xf32, #tpu.memory_space<vmem>>, vector<1x8x384xf32>
    %43 = vector.shape_cast %42 : vector<1x8x384xf32> to vector<8x384xf32>
    %c56 = arith.constant 56 : index
    %c0_58 = arith.constant 0 : index
    %44 = vector.load %arg5[%c56, %c0_58] : memref<72x768xf32, #tpu.memory_space<vmem>>, vector<8x384xf32>
    tpu.vector_store %arg5[%c56, %c0_58], %43 {strides = array<i32>} : memref<72x768xf32, #tpu.memory_space<vmem>>, vector<8x384xf32>,
    %c1_59 = arith.constant 1 : index
    %c0_60 = arith.constant 0 : index
    %c37_61 = arith.constant 37 : index
    %45 = vector.load %arg1[%c1_59, %c0_60, %c37_61] : memref<2x8x422xf32, #tpu.memory_space<vmem>>, vector<1x8x384xf32>
    %46 = vector.shape_cast %45 : vector<1x8x384xf32> to vector<8x384xf32>
    %c56_62 = arith.constant 56 : index
    %c384_63 = arith.constant 384 : index
    %47 = vector.load %arg5[%c56_62, %c384_63] : memref<72x768xf32, #tpu.memory_space<vmem>>, vector<8x384xf32>
    tpu.vector_store %arg5[%c56_62, %c384_63], %46 {strides = array<i32>} : memref<72x768xf32, #tpu.memory_space<vmem>>, vector<8x384xf32>,
    %c0_64 = arith.constant 0 : index
    %c0_65 = arith.constant 0 : index
    %c38 = arith.constant 38 : index
    %48 = vector.load %arg1[%c0_64, %c0_65, %c38] : memref<2x8x422xf32, #tpu.memory_space<vmem>>, vector<1x8x384xf32>
    %49 = vector.shape_cast %48 : vector<1x8x384xf32> to vector<8x384xf32>
    %c64 = arith.constant 64 : index
    %c0_66 = arith.constant 0 : index
    %50 = vector.load %arg5[%c64, %c0_66] : memref<72x768xf32, #tpu.memory_space<vmem>>, vector<8x384xf32>
    tpu.vector_store %arg5[%c64, %c0_66], %49 {strides = array<i32>} : memref<72x768xf32, #tpu.memory_space<vmem>>, vector<8x384xf32>,
    %c1_67 = arith.constant 1 : index
    %c0_68 = arith.constant 0 : index
    %c38_69 = arith.constant 38 : index
    %51 = vector.load %arg1[%c1_67, %c0_68, %c38_69] : memref<2x8x422xf32, #tpu.memory_space<vmem>>, vector<1x8x384xf32>
    %52 = vector.shape_cast %51 : vector<1x8x384xf32> to vector<8x384xf32>
    %c64_70 = arith.constant 64 : index
    %c384_71 = arith.constant 384 : index
    %53 = vector.load %arg5[%c64_70, %c384_71] : memref<72x768xf32, #tpu.memory_space<vmem>>, vector<8x384xf32>
    tpu.vector_store %arg5[%c64_70, %c384_71], %52 {strides = array<i32>} : memref<72x768xf32, #tpu.memory_space<vmem>>, vector<8x384xf32>,
    %c0_72 = arith.constant 0 : index
    %c0_73 = arith.constant 0 : index
    %54 = vector.load %arg2[%c0_72, %c0_73] : memref<8x72xf32, #tpu.memory_space<vmem>>, vector<8x72xf32>
    %c0_74 = arith.constant 0 : index
    %c0_75 = arith.constant 0 : index
    %55 = vector.load %arg5[%c0_74, %c0_75] : memref<72x768xf32, #tpu.memory_space<vmem>>, vector<72x768xf32>
    %cst = arith.constant dense<0.000000e+00> : vector<8x768xf32>
    %56 = tpu.matmul %54, %55, %cst {dimension_numbers = #tpu.dot_dimension_numbers<[1], [0], [0], [1], [0, 0, 1, 1], [], []>} : vector<8x72xf32>, vector<72x768xf32>, vector<8x768xf32> -> vector<8x768xf32>
    %c0_76 = arith.constant 0 : index
    %c0_77 = arith.constant 0 : index
    %57 = vector.load %arg3[%c0_76, %c0_77] : memref<8x1xf32, #tpu.memory_space<vmem>>, vector<8x1xf32>
    %58 = vector.broadcast %57 : vector<8x1xf32> to vector<8x768xf32>
    %59 = arith.addf %56, %58 : vector<8x768xf32>
    %60 = vector.extract_strided_slice %59 {offsets = [0, 0], sizes = [8, 384], strides = [1, 1]} : vector<8x768xf32> to vector<8x384xf32>
    %c0_78 = arith.constant 0 : index
    %c0_79 = arith.constant 0 : index
    %c0_80 = arith.constant 0 : index
    %61 = vector.load %arg4[%c0_78, %c0_79, %c0_80] : memref<2x8x384xf32, #tpu.memory_space<vmem>>, vector<1x8x384xf32>
    %62 = vector.shape_cast %61 : vector<1x8x384xf32> to vector<8x384xf32>
    %63 = vector.shape_cast %60 : vector<8x384xf32> to vector<1x8x384xf32>
    tpu.vector_store %arg4[%c0_78, %c0_79, %c0_80], %63 {strides = array<i32>} : memref<2x8x384xf32, #tpu.memory_space<vmem>>, vector<1x8x384xf32>,
    %64 = vector.extract_strided_slice %59 {offsets = [0, 384], sizes = [8, 384], strides = [1, 1]} : vector<8x768xf32> to vector<8x384xf32>
    %c1_81 = arith.constant 1 : index
    %c0_82 = arith.constant 0 : index
    %c0_83 = arith.constant 0 : index
    %65 = vector.load %arg4[%c1_81, %c0_82, %c0_83] : memref<2x8x384xf32, #tpu.memory_space<vmem>>, vector<1x8x384xf32>
    %66 = vector.shape_cast %65 : vector<1x8x384xf32> to vector<8x384xf32>
    %67 = vector.shape_cast %64 : vector<8x384xf32> to vector<1x8x384xf32>
    tpu.vector_store %arg4[%c1_81, %c0_82, %c0_83], %67 {strides = array<i32>} : memref<2x8x384xf32, #tpu.memory_space<vmem>>, vector<1x8x384xf32>,
    return
  }
  func.func @transform_0(%arg0: i32) -> (i32, i32, i32) {
    %c0_i32 = arith.constant 0 : i32
    %c0_i32_0 = arith.constant 0 : i32
    %c0_i32_1 = arith.constant 0 : i32
    return %arg0, %c0_i32, %c0_i32_0 : i32, i32, i32
  }
  func.func @transform_1(%arg0: i32) -> (i32, i32) {
    %c0_i32 = arith.constant 0 : i32
    %c0_i32_0 = arith.constant 0 : i32
    %c0_i32_1 = arith.constant 0 : i32
    return %c0_i32, %c0_i32_0 : i32, i32
  }
  func.func @transform_2(%arg0: i32) -> (i32, i32) {
    %c0_i32 = arith.constant 0 : i32
    %c0_i32_0 = arith.constant 0 : i32
    %c0_i32_1 = arith.constant 0 : i32
    return %c0_i32, %c0_i32_0 : i32, i32
  }
  func.func @transform_3(%arg0: i32) -> (i32, i32, i32) {
    %c0_i32 = arith.constant 0 : i32
    %c0_i32_0 = arith.constant 0 : i32
    %c0_i32_1 = arith.constant 0 : i32
    return %arg0, %c0_i32, %c0_i32_0 : i32, i32, i32
  }
}

</mosaic_0001>

<bundles_post_ra>
// kernel: tpu_custom_call.1
= control target key start
LH: loop header
LB: loop body
LE: loop exit
PB: predicated region body
PF: predicated region fallthrough
CT: control target
= control target key end

     0   :  { %8 = vsyncpa [#allocation4], 0  ;;  %s1272_s0 = inlined_call_operand.hbm [shape: f32[2,8,422], index: 0, kind: input, shape index: {}]   ;;  %s1273_s1 = inlined_call_operand.vmem [shape: f32[8,72], index: 1, kind: input, shape index: {}]   ;;  %s1274_s2 = inlined_call_operand.vmem [shape: f32[8,1], index: 2, kind: input, shape index: {}]   ;;  %s1275_s3 = inlined_call_operand.hbm [shape: f32[2,8,384], index: 3, kind: output, shape index: {}]  }
   0x1   :  { %9 = vsyncpa [#allocation5], 0  ;;  %s1004_s12 = smov [#allocation3]   ;;  %s956_s16 = scalar_lea.hbm %s1272_s0, 1024 }
   0x2   :  { %s15_s13 = sshll.u32 %s1004_s12, 4  ;;  %p957_p0 = scmp.ne.s32.totalorder %s1272_s0, %s956_s16  ;;  %s16_s13 = int_to_ptr.vmem [resolvable:$true] %s15_s13 }
   0x3   :  { %p960_p1 = scmp.lt.u32.totalorder %s956_s16, %s1272_s0 }
   0x5   :  { %p962_p2 = pnand %p960_p1, %p957_p0 }
   0x7   :  { %965 = shalt.err (!%p962_p2)
}
   0x8   :  { %s966_s21 = scalar_lea.vmem %s16_s13, 1024  ;;  %p971_p4 = scmp.lt.s32.totalorder %s16_s13, %s16_s13 }
   0x9   :  { %p967_p3 = scmp.ne.s32.totalorder %s16_s13, %s966_s21  ;;  %p972_p5 = scmp.lt.s32.totalorder %s966_s21, %s966_s21 }
   0xb   :  { %p973_p6 = por %p972_p5, %p971_p4 }
   0xd   :  { %p974_p7 = pnand %p973_p6, %p967_p3 }
   0xf   :  { %977 = shalt.err (!%p974_p7)
}
  0x10   :  { %s1005_s22 = smov 512   ;;  %s1006_s23 = smov 32  }
  0x11   :  { %21 = dma.hbm_to_vmem [thread:$0]  %s1272_s0, 1024, %s16_s13, [#allocation4], %s1005_s22, %s1005_s22, %s1006_s23  }
  0x12   :  { %1000 = dma.done.wait [#allocation4], 1024  }
  0x13   :  { %1001 = vsyncadd [#allocation4], 4294966272  ;;  %v1052_v0 = vld [vmem:[#allocation3 + $0x8] sm:$0xff]  ;;  %v1054_v1 = vld [vmem:[#allocation3 + $0x10] sm:$0xff]  ;;  %s1007_s26 = smov 126   ;;  %s1008_s27 = smov 127  }
  0x14   :  { %v1056_v2 = vld [vmem:[#allocation3] sm:$0xff]  ;;  %v829_v3 = vpack.i.bf16 %v1054_v1, %v1052_v0  ;;  %s1009_s0 = smov 110   ;;  %s1010_s28 = smov 108   ;;  %v45_v6 = vld [vmem:[#allocation3 + $0x18] sm:$0xff]  ;;  %v1074_v8 = vld [vmem:[#allocation3 + $0x28] sm:$0xff]  ;;  %v1014_v12 = vmov 0.0  }
  0x15   :  { %v1060_v4 = vld [vmem:[#allocation3 + $0x20] sm:$0xff]  ;;  %s1011_s29 = smov 109   ;;  %s1012_s30 = smov 91   ;;  %v71_v7 = vld [vmem:[#allocation3 + $0x38] sm:$0xff]  ;;  %v1076_v9 = vld [vmem:[#allocation3 + $0x30] sm:$0xff]  ;;  %579 = vmatprep.mubr.f32.mxu0 %v1014_v12  ;;  %650 = vmatprep.mubr.f32.mxu1 %v1014_v12  ;;  %v1016_v15 = vmov 0  }
  0x16   :  { %830 = vrot.lane.b32.xlu1 %v829_v3, %s1007_s26  ;;  %820 = vrot.lane.b32.xlu0 %v829_v3, %s1008_s27  ;;  %v824_v5 = vpack.i.bf16 %v1060_v4, %v1056_v2  ;;  %s1013_s4 = smov 92   ;;  %v889_v10 = vpack.i.bf16 %v45_v6, %v71_v7  ;;  %v884_v11 = vpack.i.bf16 %v1076_v9, %v1074_v8  ;;  %s1015_s5 = smov 90   ;;  %v505_v16 = vld [vmem:[%s1274_s2] sm:$0xff]  ;;  %vm58_vm0 = vcmask 1039360  }
  0x17   :  { %v944_v13 = vpack.i.bf16 %v1074_v8, %v1060_v4  ;;  %v949_v14 = vpack.i.bf16 %v71_v7, %v1076_v9  ;;  %954 = vset.pattern.permute.xlu1 %v1016_v15  ;;  %955 = vset.pattern.permute.xlu0 %v1016_v15  ;;  %vm109_vm1 = vcmask 1031168   ;;  %vm160_vm2 = vcmask 900096  }
  0x18   :  { %vm211_vm3 = vcmask 891904   ;;  %vm262_vm4 = vcmask 883712   ;;  %vm364_vm5 = vcmask 744448   ;;  %vm313_vm6 = vcmask 752640  }
  0x19   :  { %vm415_vm7 = vcmask 736256   ;;  %vm511_vm8 = vcmask 588800  }
  0x1a   :  { %835 = vrot.lane.b32.xlu1 %v829_v3, %s1009_s0  ;;  %825 = vrot.lane.b32.xlu0 %v824_v5, %s1008_s27 }
  0x1e   :  { %845 = vrot.lane.b32.xlu1 %v824_v5, %s1009_s0  ;;  %840 = vrot.lane.b32.xlu0 %v824_v5, %s1007_s26 }
  0x22   :  { %855 = vrot.lane.b32.xlu1 %v829_v3, %s1010_s28  ;;  %850 = vrot.lane.b32.xlu0 %v829_v3, %s1011_s29 }
  0x26   :  { %865 = vrot.lane.b32.xlu1 %v824_v5, %s1010_s28  ;;  %860 = vrot.lane.b32.xlu0 %v824_v5, %s1011_s29 }
  0x2a   :  { %875 = vrot.lane.b32.xlu1 %v829_v3, %s1012_s30  ;;  %870 = vrot.lane.b32.xlu0 %v829_v3, %s1013_s4 }
  0x2e   :  { %356 = vrot.lane.b32.xlu1 %v1056_v2, %s1012_s30  ;;  %880 = vrot.lane.b32.xlu0 %v824_v5, %s1013_s4 }
  0x32   :  { %890 = vrot.lane.b32.xlu1 %v889_v10, %s1008_s27  ;;  %885 = vrot.lane.b32.xlu0 %v884_v11, %s1008_s27 }
  0x36   :  { %411 = vrot.lane.b32.xlu1 %v1054_v1, %s1015_s5  ;;  %409 = vrot.lane.b32.xlu0 %v1052_v0, %s1015_s5 }
  0x3a   :  { %895 = vrot.lane.b32.xlu1 %v884_v11, %s1007_s26  ;;  %407 = vrot.lane.b32.xlu0 %v1056_v2, %s1015_s5 }
  0x3e   :  { %905 = vrot.lane.b32.xlu1 %v884_v11, %s1009_s0  ;;  %900 = vrot.lane.b32.xlu0 %v889_v10, %s1007_s26 }
  0x42   :  { %915 = vrot.lane.b32.xlu1 %v884_v11, %s1011_s29  ;;  %910 = vrot.lane.b32.xlu0 %v889_v10, %s1009_s0 }
  0x46   :  { %925 = vrot.lane.b32.xlu1 %v884_v11, %s1010_s28  ;;  %920 = vrot.lane.b32.xlu0 %v889_v10, %s1011_s29 }
  0x4a   :  { %935 = vrot.lane.b32.xlu1 %v884_v11, %s1013_s4  ;;  %930 = vrot.lane.b32.xlu0 %v889_v10, %s1010_s28 }
  0x4e   :  { %945 = vrot.lane.b32.xlu1 %v944_v13, %s1012_s30  ;;  %940 = vrot.lane.b32.xlu0 %v889_v10, %s1013_s4 }
  0x52   :  { %362 = vrot.lane.b32.xlu1 %v45_v6, %s1012_s30  ;;  %950 = vrot.lane.b32.xlu0 %v949_v14, %s1012_s30 }
  0x56   :  { %435 = vrot.lane.b32.xlu1 %v1074_v8, %s1015_s5  ;;  %433 = vrot.lane.b32.xlu0 %v1060_v4, %s1015_s5 }
  0x5a   :  { %439 = vrot.lane.b32.xlu1 %v71_v7, %s1015_s5  ;;  %437 = vrot.lane.b32.xlu0 %v1076_v9, %s1015_s5 }
  0x5e   :  { %413 = vrot.lane.b32.xlu0 %v45_v6, %s1015_s5  ;;  %508 = vperm.xlu1 %954, %v505_v16  }
  0x88   :  { %v1110_v17 = vpop.permute.xlu1 %830  ;;  %v1112_v18 = vpop.permute.xlu0 %820 }
  0x89   :  { %v833_v19 = vunpack.i.h.bf16 %v1110_v17  ;;  %v832_v20 = vunpack.i.l.bf16 %v1110_v17  ;;  %v823_v21 = vunpack.i.h.bf16 %v1112_v18  ;;  %v822_v22 = vunpack.i.l.bf16 %v1112_v18 }
  0x8b   :  { %v60_v23 = vsel %vm58_vm0, %v822_v22, %v823_v21  ;;  %v111_v30 = vsel %vm109_vm1, %v832_v20, %v833_v19 }
  0x8c   :  { %v1121_v24 = vpop.permute.xlu1 %835  ;;  %v1123_v25 = vpop.permute.xlu0 %825  ;;  %v755_v26 = vpack.c.bf16 %v60_v23, %v1052_v0 }
  0x8d   :  { %v838_v27 = vunpack.i.h.bf16 %v1121_v24  ;;  %v837_v28 = vunpack.i.l.bf16 %v1121_v24  ;;  %v827_v29 = vunpack.i.l.bf16 %v1123_v25  ;;  %v828_v16 = vunpack.i.h.bf16 %v1123_v25 }
  0x8e   :  { %756 = vmatprep.subr.bf16.mxu0 %v755_v26 }
  0x8f   :  { %v59_v31 = vsel %vm58_vm0, %v827_v29, %v822_v22  ;;  %v162_v32 = vsel %vm160_vm2, %v837_v28, %v838_v27 }
  0x90   :  { %v1136_v33 = vpop.permute.xlu1 %845  ;;  %v1138_v34 = vpop.permute.xlu0 %840  ;;  %v757_v35 = vpack.c.bf16 %v59_v31, %v1056_v2  ;;  %v759_v36 = vpack.c.bf16 %v162_v32, %v111_v30 }
  0x91   :  { %v847_v37 = vunpack.i.l.bf16 %v1136_v33  ;;  %v842_v38 = vunpack.i.l.bf16 %v1138_v34 }
  0x92   :  { %758 = vmatpush1.bf16.msra.mxu0 %v757_v35 }
  0x93   :  { %760 = vmatprep.subr.bf16.mxu0 %v759_v36  ;;  %v110_v39 = vsel %vm109_vm1, %v842_v38, %v832_v20  ;;  %v161_v40 = vsel %vm160_vm2, %v847_v37, %v837_v28 }
  0x94   :  { %v1145_v41 = vpop.permute.xlu1 %855  ;;  %v1147_v42 = vpop.permute.xlu0 %850  ;;  %v761_v43 = vpack.c.bf16 %v161_v40, %v110_v39 }
  0x95   :  { %v858_v44 = vunpack.i.h.bf16 %v1145_v41  ;;  %v857_v45 = vunpack.i.l.bf16 %v1145_v41  ;;  %v853_v46 = vunpack.i.h.bf16 %v1147_v42  ;;  %v852_v47 = vunpack.i.l.bf16 %v1147_v42 }
  0x96   :  { %762 = vmatpush1.bf16.msra.mxu0 %v761_v43 }
  0x97   :  { %v213_v48 = vsel %vm211_vm3, %v852_v47, %v853_v46  ;;  %v264_v49 = vsel %vm262_vm4, %v857_v45, %v858_v44 }
  0x98   :  { %v1159_v50 = vpop.permute.xlu1 %865  ;;  %v1161_v51 = vpop.permute.xlu0 %860  ;;  %v763_v52 = vpack.c.bf16 %v264_v49, %v213_v48  ;;  %v843_v48 = vunpack.i.h.bf16 %v1138_v34 }
  0x99   :  { %v867_v53 = vunpack.i.l.bf16 %v1159_v50  ;;  %v862_v54 = vunpack.i.l.bf16 %v1161_v51 }
  0x9a   :  { %764 = vmatprep.subr.bf16.mxu0 %v763_v52 }
  0x9b   :  { %v212_v55 = vsel %vm211_vm3, %v862_v54, %v852_v47  ;;  %v263_v56 = vsel %vm262_vm4, %v867_v53, %v857_v45  ;;  %v848_v47 = vunpack.i.h.bf16 %v1136_v33 }
  0x9c   :  { %v1167_v57 = vpop.permute.xlu1 %875  ;;  %v1169_v58 = vpop.permute.xlu0 %870  ;;  %v765_v59 = vpack.c.bf16 %v263_v56, %v212_v55 }
  0x9d   :  { %v878_v60 = vunpack.i.h.bf16 %v1167_v57  ;;  %v877_v61 = vunpack.i.l.bf16 %v1167_v57  ;;  %v873_v62 = vunpack.i.h.bf16 %v1169_v58  ;;  %v872_v63 = vunpack.i.l.bf16 %v1169_v58 }
  0x9e   :  { %766 = vmatpush1.bf16.msra.mxu0 %v765_v59 }
  0x9f   :  { %v315_v0 = vsel %vm313_vm6, %v872_v63, %v873_v62  ;;  %v366_v2 = vsel %vm364_vm5, %v877_v61, %v878_v60 }
  0xa0   :  { %v357_v3 = vpop.permute.xlu1 %356  ;;  %v1181_v5 = vpop.permute.xlu0 %880  ;;  %v767_v6 = vpack.c.bf16 %v366_v2, %v315_v0 }
  0xa1   :  { %v365_v7 = vsel %vm364_vm5, %v357_v3, %v877_v61  ;;  %v882_v10 = vunpack.i.l.bf16 %v1181_v5 }
  0xa2   :  { %768 = vmatprep.subr.bf16.mxu0 %v767_v6 }
  0xa3   :  { %v314_v11 = vsel %vm313_vm6, %v882_v10, %v872_v63 }
  0xa4   :  { %v891_v13 = vpop.permute.xlu1 %890  ;;  %v886_v14 = vpop.permute.xlu0 %885  ;;  %v769_v15 = vpack.c.bf16 %v365_v7, %v314_v11 }
  0xa5   :  { %v893_v20 = vunpack.i.h.bf16 %v891_v13  ;;  %v887_v22 = vunpack.i.l.bf16 %v886_v14  ;;  %v892_v23 = vunpack.i.l.bf16 %v891_v13  ;;  %v888_v26 = vunpack.i.h.bf16 %v886_v14 }
  0xa6   :  { %770 = vmatpush1.bf16.msra.mxu0 %v769_v15  ;;  %v868_v15 = vunpack.i.h.bf16 %v1159_v50 }
  0xa7   :  { %v84_v28 = vsel %vm58_vm0, %v828_v16, %v887_v22  ;;  %v61_v29 = vsel %vm58_vm0, %v823_v21, %v893_v20  ;;  %v86_v36 = vsel %vm58_vm0, %v888_v26, %v892_v23  ;;  %v85_v37 = vsel %vm58_vm0, %v887_v22, %v888_v26  ;;  %v1202_v21 = vld [vmem:[%s1273_s1] sm:$0xff]  ;;  %s1017_s1 = smov [#allocation6]  }
  0xa8   :  { %v1191_v30 = vpop.permute.xlu1 %411  ;;  %v410_v31 = vpop.permute.xlu0 %409  ;;  %v771_v32 = vpack.c.bf16 %v84_v28, %v1060_v4  ;;  %v773_v35 = vpack.c.bf16 %v61_v29, %v1054_v1  ;;  %v787_v4 = vpack.c.bf16 %v86_v36, %v1076_v9  ;;  %v789_v39 = vpack.c.bf16 %v85_v37, %v1074_v8  ;;  %s740_s9 = sshll.u32 %s1017_s1, 4  ;;  %s741_s9 = int_to_ptr.vmem [resolvable:$true] %s740_s9 }
  0xa9   :  { %v417_v25 = vsel %vm415_vm7, %v410_v31, %v1191_v30  ;;  %v863_v16 = vunpack.i.h.bf16 %v1161_v51  ;;  %s978_s10 = scalar_lea.vmem %s741_s9, 768  ;;  %p983_p9 = scmp.lt.s32.totalorder %s741_s9, %s741_s9 }
  0xaa   :  { %531 = vmatprep.subr.mxu0 %v417_v25  ;;  %772 = vmatprep.subr.bf16.mxu1 %v771_v32  ;;  %p979_p8 = scmp.ne.s32.totalorder %s741_s9, %s978_s10  ;;  %p984_p10 = scmp.lt.s32.totalorder %s978_s10, %s978_s10 }
  0xab   :  { %774 = vmatpush1.bf16.msra.mxu1 %v773_v35 }
  0xac   :  { %v896_v18 = vpop.permute.xlu1 %895  ;;  %v408_v38 = vpop.permute.xlu0 %407  ;;  %p985_p11 = por %p984_p10, %p983_p9 }
  0xad   :  { %v416_v1 = vsel %vm415_vm7, %v408_v38, %v410_v31  ;;  %v897_v40 = vunpack.i.l.bf16 %v896_v18  ;;  %v898_v52 = vunpack.i.h.bf16 %v896_v18 }
  0xae   :  { %532 = vmatpush1.msra.mxu0 %v416_v1  ;;  %v883_v1 = vunpack.i.h.bf16 %v1181_v5  ;;  %p986_p12 = pnand %p985_p11, %p979_p8 }
  0xaf   :  { %788 = vmatprep.subr.bf16.mxu0 %v787_v4  ;;  %752 = vmatmul.mubr.msk.f32.vlgmr.msra.gmra.mrb[0].mxu0 %vm511_vm8, %v1202_v21  ;;  %v135_v54 = vsel %vm109_vm1, %v843_v48, %v897_v40 }
  0xb0   :  { %v906_v43 = vpop.permute.xlu1 %905  ;;  %v901_v45 = vpop.permute.xlu0 %900  ;;  %790 = vmatpush1.bf16.msra.mxu0 %v789_v39  ;;  %721 = vmatprep.mubr.f32.mxu0 %v1014_v12  ;;  %v136_v12 = vsel %vm109_vm1, %v897_v40, %v898_v52 }
  0xb1   :  { %v907_v49 = vunpack.i.l.bf16 %v906_v43  ;;  %v908_v9 = vunpack.i.h.bf16 %v906_v43  ;;  %v903_v53 = vunpack.i.h.bf16 %v901_v45  ;;  %v902_v8 = vunpack.i.l.bf16 %v901_v45 }
  0xb3   :  { %v186_v55 = vsel %vm160_vm2, %v848_v47, %v907_v49  ;;  %v187_v33 = vsel %vm160_vm2, %v907_v49, %v908_v9  ;;  %v112_v34 = vsel %vm109_vm1, %v833_v19, %v903_v53  ;;  %v137_v6 = vsel %vm109_vm1, %v898_v52, %v902_v8 }
  0xb4   :  { %v916_v56 = vpop.permute.xlu1 %915  ;;  %v911_v59 = vpop.permute.xlu0 %910  ;;  %v775_v61 = vpack.c.bf16 %v186_v55, %v135_v54  ;;  %v793_v17 = vpack.c.bf16 %v187_v33, %v136_v12 }
  0xb5   :  { %v913_v63 = vunpack.i.h.bf16 %v911_v59  ;;  %v912_v0 = vunpack.i.l.bf16 %v911_v59  ;;  %v917_v2 = vunpack.i.l.bf16 %v916_v56  ;;  %v918_v19 = vunpack.i.h.bf16 %v916_v56 }
  0xb6   :  { %776 = vmatprep.subr.bf16.mxu1 %v775_v61 }
  0xb7   :  { %v163_v3 = vsel %vm160_vm2, %v838_v27, %v913_v63  ;;  %v188_v7 = vsel %vm160_vm2, %v908_v9, %v912_v0  ;;  %v237_v27 = vsel %vm211_vm3, %v863_v16, %v917_v2  ;;  %v238_v51 = vsel %vm211_vm3, %v917_v2, %v918_v19 }
  0xb8   :  { %v926_v10 = vpop.permute.xlu1 %925  ;;  %v921_v11 = vpop.permute.xlu0 %920  ;;  %v777_v13 = vpack.c.bf16 %v163_v3, %v112_v34  ;;  %v791_v14 = vpack.c.bf16 %v188_v7, %v137_v6 }
  0xb9   :  { %v927_v20 = vunpack.i.l.bf16 %v926_v10  ;;  %v928_v22 = vunpack.i.h.bf16 %v926_v10  ;;  %v923_v23 = vunpack.i.h.bf16 %v921_v11  ;;  %v922_v24 = vunpack.i.l.bf16 %v921_v11 }
  0xba   :  { %778 = vmatpush1.bf16.msra.mxu1 %v777_v13  ;;  %792 = vmatprep.subr.bf16.mxu0 %v791_v14 }
  0xbb   :  { %794 = vmatpush1.bf16.msra.mxu0 %v793_v17  ;;  %v288_v26 = vsel %vm262_vm4, %v868_v15, %v927_v20  ;;  %v289_v35 = vsel %vm262_vm4, %v927_v20, %v928_v22  ;;  %v214_v25 = vsel %vm211_vm3, %v853_v46, %v923_v23  ;;  %v239_v18 = vsel %vm211_vm3, %v918_v19, %v922_v24 }
  0xbc   :  { %v936_v28 = vpop.permute.xlu1 %935  ;;  %v931_v29 = vpop.permute.xlu0 %930  ;;  %v779_v31 = vpack.c.bf16 %v288_v26, %v237_v27  ;;  %v797_v45 = vpack.c.bf16 %v289_v35, %v238_v51 }
  0xbd   :  { %v933_v32 = vunpack.i.h.bf16 %v931_v29  ;;  %v932_v50 = vunpack.i.l.bf16 %v931_v29  ;;  %v937_v36 = vunpack.i.l.bf16 %v936_v28  ;;  %v938_v46 = vunpack.i.h.bf16 %v936_v28 }
  0xbe   :  { %780 = vmatprep.subr.bf16.mxu1 %v779_v31 }
  0xbf   :  { %v265_v37 = vsel %vm262_vm4, %v858_v44, %v933_v32  ;;  %v290_v38 = vsel %vm262_vm4, %v928_v22, %v932_v50  ;;  %v339_v44 = vsel %vm313_vm6, %v883_v1, %v937_v36  ;;  %v340_v59 = vsel %vm313_vm6, %v937_v36, %v938_v46 }
  0xc0   :  { %v946_v4 = vpop.permute.xlu1 %945  ;;  %v941_v39 = vpop.permute.xlu0 %940  ;;  %v781_v40 = vpack.c.bf16 %v265_v37, %v214_v25  ;;  %v795_v43 = vpack.c.bf16 %v290_v38, %v239_v18 }
  0xc1   :  { %v948_v47 = vunpack.i.h.bf16 %v946_v4  ;;  %v947_v42 = vunpack.i.l.bf16 %v946_v4  ;;  %v943_v48 = vunpack.i.h.bf16 %v941_v39  ;;  %v942_v41 = vunpack.i.l.bf16 %v941_v39 }
  0xc2   :  { %782 = vmatpush1.bf16.msra.mxu1 %v781_v40  ;;  %796 = vmatprep.subr.bf16.mxu0 %v795_v43 }
  0xc3   :  { %798 = vmatpush1.bf16.msra.mxu0 %v797_v45  ;;  %v390_v49 = vsel %vm364_vm5, %v947_v42, %v948_v47  ;;  %v316_v53 = vsel %vm313_vm6, %v873_v62, %v943_v48  ;;  %v341_v63 = vsel %vm313_vm6, %v938_v46, %v942_v41 }
  0xc4   :  { %v363_v52 = vpop.permute.xlu1 %362  ;;  %v951_v9 = vpop.permute.xlu0 %950  ;;  %v783_v5 = vpack.c.bf16 %v390_v49, %v339_v44 }
  0xc5   :  { %v367_v8 = vsel %vm364_vm5, %v878_v60, %v363_v52  ;;  %v953_v54 = vunpack.i.h.bf16 %v951_v9  ;;  %v952_v55 = vunpack.i.l.bf16 %v951_v9 }
  0xc6   :  { %v785_v56 = vpack.c.bf16 %v367_v8, %v316_v53  ;;  %784 = vmatprep.subr.bf16.mxu1 %v783_v5 }
  0xc7   :  { %v391_v61 = vsel %vm364_vm5, %v948_v47, %v952_v55  ;;  %v392_v0 = vsel %vm364_vm5, %v952_v55, %v953_v54 }
  0xc8   :  { %v801_v12 = vpack.c.bf16 %v391_v61, %v340_v59  ;;  %v436_v58 = vpop.permute.xlu1 %435  ;;  %v434_v33 = vpop.permute.xlu0 %433  ;;  %786 = vmatpush1.bf16.msra.mxu1 %v785_v56  ;;  %v799_v62 = vpack.c.bf16 %v392_v0, %v341_v63 }
  0xc9   :  { %v441_v57 = vsel %vm415_vm7, %v434_v33, %v436_v58 }
  0xca   :  { %602 = vmatprep.subr.mxu1 %v441_v57  ;;  %800 = vmatprep.subr.bf16.mxu0 %v799_v62 }
  0xcb   :  { %802 = vmatpush1.bf16.msra.mxu0 %v801_v12 }
  0xcc   :  { %v440_v60 = vpop.permute.xlu1 %439  ;;  %v438_v34 = vpop.permute.xlu0 %437 }
  0xcd   :  { %v442_v2 = vsel %vm415_vm7, %v436_v58, %v438_v34  ;;  %v443_v3 = vsel %vm415_vm7, %v438_v34, %v440_v60 }
  0xce   :  { %673 = vmatprep.subr.mxu0 %v443_v3 }
  0xcf   :  { %674 = vmatpush1.msra.mxu0 %v442_v2 }
  0xd0   :  { %v414_v6 = vpop.permute.xlu0 %413  ;;  %754 = vmatmul.mubr.msk.f32.vlgmr.msra.gmra.mrb[2].mxu0 %vm511_vm8, %v1202_v21 }
  0xd1   :  { %v418_v7 = vsel %vm415_vm7, %v1191_v30, %v414_v6 }
  0xd2   :  { %603 = vmatpush1.msra.mxu1 %v418_v7 }
  0xd3   :  { %753 = vmatmul.mubr.msk.f32.vlgmr.msra.gmra.mrb[0].mxu1 %vm511_vm8, %v1202_v21 }
  0xdd   :  { %v509_v10 = vpop.permute.xlu1 %508 }
 0x182   :  { %v581_v11 = vpop.f32.mrb[0].mxu0 }
 0x183   :  { %v582_v13 = vadd.f32 %v581_v11, %v509_v10  ;;  %v583_v14 = vpop.f32.mrb[1].mxu0 }
 0x184   :  { %v584_v15 = vadd.f32 %v583_v14, %v509_v10 }
 0x185   :  { %728 = vst [vmem:[#allocation6] sm:$0xff] %v582_v13 }
 0x186   :  { %729 = vst [vmem:[#allocation6 + $0x8] sm:$0xff] %v584_v15 }
 0x1a3   :  { %v723_v16 = vpop.f32.mrb[2].mxu0 }
 0x1a4   :  { %v724_v17 = vadd.f32 %v723_v16, %v509_v10  ;;  %v725_v20 = vpop.f32.mrb[3].mxu0 }
 0x1a5   :  { %v726_v19 = vadd.f32 %v725_v20, %v509_v10 }
 0x1a6   :  { %733 = vst [vmem:[#allocation6 + $0x20] sm:$0xff] %v724_v17  ;;  %v652_v22 = vpop.f32.mrb[0].mxu1 }
 0x1a7   :  { %v653_v30 = vadd.f32 %v652_v22, %v509_v10  ;;  %734 = vst [vmem:[#allocation6 + $0x28] sm:$0xff] %v726_v19  ;;  %v654_v23 = vpop.f32.mrb[1].mxu1 }
 0x1a8   :  { %v655_v21 = vadd.f32 %v654_v23, %v509_v10 }
 0x1a9   :  { %730 = vst [vmem:[#allocation6 + $0x10] sm:$0xff] %v653_v30 }
 0x1aa   :  { %732 = vst [vmem:[#allocation6 + $0x18] sm:$0xff] %v655_v21 }
 0x1ab   :  { %989 = shalt.err (!%p986_p12)
}
 0x1ac   :  { %s990_s13 = scalar_lea.hbm %s1275_s3, 768 }
 0x1ad   :  { %p991_p13 = scmp.ne.s32.totalorder %s1275_s3, %s990_s13  ;;  %p994_p0 = scmp.lt.u32.totalorder %s990_s13, %s1275_s3 }
 0x1af   :  { %p996_p1 = pnand %p994_p0, %p991_p13 }
 0x1b1   :  { %999 = shalt.err (!%p996_p1)
}
 0x1b2   :  { %s1018_s18 = smov 384   ;;  %s1019_s19 = smov 24  }
 0x1b3   :  { %746 = dma.vmem_to_hbm [thread:$0]  %s741_s9, 768, %s1275_s3, [#allocation5], %s1018_s18, %s1018_s18, %s1019_s19  }
 0x1b4   :  { %1002 = dma.done.wait [#allocation5], 768  }
 0x1b5   :  { %1003 = vsyncadd [#allocation5], 4294966528 }
 0x1b6   :  { %750 = vsyncpa [#allocation4], 1 }
 0x1b7   :  { %751 = vsyncpa [#allocation5], 1 }

</bundles_post_ra>
